<compile_context>
chip_gen: v7x
topology: tpu7x:2x2x1
jax: 0.10.0
libtpu: 0.0.40
codegen_flags: <defaults>
</compile_context>

<pallas_src>
import functools

import jax
import jax.numpy as jnp
from jax.experimental import pallas as pl
from jax.experimental.pallas import tpu as pltpu

EPSILON = 1e-07


def _cdiv(a, b):
    return -(-a // b)


def _entropy_kernel(x_ref, out_ref, acc_ref, *, tile_rows, lane_width, inner_steps,
                    full_rows, rem_cols, need_mask):
    o = pl.program_id(0)      # outer chunk / core ("parallel")
    i = pl.program_id(1)      # streaming reduction step ("arbitrary")

    @pl.when(i == 0)
    def _():
        acc_ref[...] = jnp.zeros_like(acc_ref)

    # Hot path: cast in-kernel (input may be bf16), add eps, p*log(p).
    p = x_ref[...].astype(jnp.float32) + EPSILON
    plogp = p * jnp.log(p)                       # negation folded into the wrapper

    if need_mask:
        # Logical (unclamped) row-block index of this step. Rows/lanes past the valid
        # data (lane padding, partial last block, clamped duplicate blocks) -> zero.
        blk = o * inner_steps + i
        row = jax.lax.broadcasted_iota(jnp.int32, plogp.shape, 0) + blk * tile_rows
        col = jax.lax.broadcasted_iota(jnp.int32, plogp.shape, 1)
        valid = (row < full_rows) | ((row == full_rows) & (col < rem_cols))
        plogp = jnp.where(valid, plogp, 0.0)

    # Lane-resident accumulator: sublane-only reduce per block; the expensive
    # cross-lane collapse happens once, outside the kernel, on a tiny partial.
    acc_ref[...] += jnp.sum(plogp, axis=0, keepdims=True)

    @pl.when(i == inner_steps - 1)
    def _():
        out_ref[...] = acc_ref[...]


def entropy_loss(prob_distribution, *, lane_width=512, row_tile=1024, num_cores=2):
    """Pallas equivalent of EntropyLoss.forward. Returns a f32 scalar."""
    c = prob_distribution.shape[-1]
    n_elems = int(prob_distribution.size)
    n_rows = n_elems // c                      # number of per-row entropies averaged

    # --- lane-dense repack: flatten and view as [r2, lane_width] ---
    flat = prob_distribution.reshape(-1)
    r2 = _cdiv(n_elems, lane_width)
    padded = r2 * lane_width
    if padded != n_elems:                      # pad the tail only when needed (masked in-kernel)
        flat = jnp.pad(flat, (0, padded - n_elems))
    x2d = flat.reshape(r2, lane_width)

    # --- row tiling: big streaming blocks, sublane-aligned for the input dtype ---
    min_sub = max(1, 32 // max(1, jnp.dtype(prob_distribution.dtype).itemsize))
    row_tile = max(min_sub, _cdiv(row_tile, min_sub) * min_sub)
    tile = row_tile if r2 >= row_tile else r2  # full-dim block for small inputs (always legal)
    nblocks = _cdiv(r2, tile)                  # last block may be partial (masked)

    # --- split row blocks across TensorCores (v7x has 2 TCs; no-op on v5e/v6e) ---
    nc = max(1, min(num_cores, nblocks))
    inner = _cdiv(nblocks, nc)

    need_mask = (padded != n_elems) or (nblocks * tile != r2) or (nc * inner != nblocks)

    kernel = functools.partial(
        _entropy_kernel,
        tile_rows=tile, lane_width=lane_width, inner_steps=inner,
        full_rows=n_elems // lane_width, rem_cols=n_elems % lane_width,
        need_mask=need_mask)

    partials = pl.pallas_call(
        kernel,
        out_shape=jax.ShapeDtypeStruct((nc, lane_width), jnp.float32),
        grid_spec=pltpu.PrefetchScalarGridSpec(
            num_scalar_prefetch=0,
            grid=(nc, inner),
            in_specs=[pl.BlockSpec(
                (tile, lane_width),
                # clamp so extra (core, step) pairs re-read the last block; the
                # kernel's mask (built from the unclamped index) zeroes them out.
                lambda o, i: (jnp.minimum(o * inner + i, nblocks - 1), 0))],
            out_specs=pl.BlockSpec((1, lane_width), lambda o, i: (o, 0)),
            scratch_shapes=[pltpu.VMEM((1, lane_width), jnp.float32)],
        ),
        compiler_params=pltpu.CompilerParams(
            dimension_semantics=("parallel", "arbitrary"),
        ),
    )(x2d)

    # Single cross-lane collapse + negate + mean on the tiny (nc, lane_width) partials.
    return -jnp.sum(partials) / jnp.float32(n_rows)


def entropy_loss_ref(prob_distribution):
    p = prob_distribution.astype(jnp.float32) + EPSILON
    return jnp.mean(jnp.sum(-p * jnp.log(p), axis=-1))


if __name__ == "__main__":
    key = jax.random.PRNGKey(0)
    k1, k2, k3 = jax.random.split(key, 3)

    # (batch=2, seq=8, classes=32): lane-aligned, single-block fast path
    p1 = jax.nn.softmax(jax.random.normal(k1, (2, 8, 32), jnp.float32), axis=-1)
    # ragged size (3*5*7 = 105 elems): exercises lane padding + in-kernel mask
    p2 = jax.nn.softmax(jax.random.normal(k2, (3, 5, 7), jnp.float32), axis=-1)
    # (10, 32, 32) with small row_tile: multi-block grid, partial last block,
    # clamped duplicate block, and the 2-way "parallel" core split
    p3 = jax.nn.softmax(jax.random.normal(k3, (10, 32, 32), jnp.float32), axis=-1)

    cases = [
        (p1, {}),
        (p2, {}),
        (p3, dict(row_tile=8, num_cores=2)),
    ]
    for probs, kwargs in cases:
        out = jax.block_until_ready(entropy_loss(probs, **kwargs))
        ref = jax.block_until_ready(entropy_loss_ref(probs))
        assert jnp.allclose(out, ref, rtol=1e-5, atol=1e-6), (probs.shape, out, ref)

    print("KERNEL_OK")
</pallas_src>

<mosaic_0001>
module attributes {stable_mosaic.version = 11 : i64} {
  func.func @_entropy_kernel(%arg0: i32, %arg1: i32, %arg2: memref<1x512xf32, #tpu.memory_space<vmem>>, %arg3: memref<1x512xf32, #tpu.memory_space<vmem>>, %arg4: memref<1x512xf32, #tpu.memory_space<vmem>>) attributes {dimension_semantics = [#tpu.dimension_semantics<parallel>, #tpu.dimension_semantics<arbitrary>], iteration_bounds = array<i64: 1, 1>, scalar_prefetch = 0 : i64, scratch_operands = 1 : i64, tpu.core_type = #tpu.core_type<tc>, window_params = [{transform_indices = @transform_0, window_bounds = array<i64: 1, 512>}, {transform_indices = @transform_1, window_bounds = array<i64: 1, 512>}]} {
    %c0_i32 = arith.constant 0 : i32
    %0 = arith.cmpi eq, %arg1, %c0_i32 : i32
    %1 = arith.extui %0 : i1 to i32
    %c0_i32_0 = arith.constant 0 : i32
    %2 = arith.cmpi ne, %1, %c0_i32_0 : i32
    scf.if %2 {
      %cst_9 = arith.constant 0.000000e+00 : f32
      %16 = vector.broadcast %cst_9 : f32 to vector<1x512xf32>
      %c0_10 = arith.constant 0 : index
      %c0_11 = arith.constant 0 : index
      %17 = vector.load %arg4[%c0_10, %c0_11] : memref<1x512xf32, #tpu.memory_space<vmem>>, vector<1x512xf32>
      tpu.vector_store %arg4[%c0_10, %c0_11], %16 {strides = array<i32>} : memref<1x512xf32, #tpu.memory_space<vmem>>, vector<1x512xf32>,
    } else {
    }
    %c0 = arith.constant 0 : index
    %c0_1 = arith.constant 0 : index
    %3 = vector.load %arg2[%c0, %c0_1] : memref<1x512xf32, #tpu.memory_space<vmem>>, vector<1x512xf32>
    %cst = arith.constant 1.000000e-07 : f32
    %4 = vector.broadcast %cst : f32 to vector<1x512xf32>
    %5 = arith.addf %3, %4 : vector<1x512xf32>
    %6 = math.log %5 : vector<1x512xf32>
    %7 = arith.mulf %5, %6 : vector<1x512xf32>
    %c0_2 = arith.constant 0 : index
    %c0_3 = arith.constant 0 : index
    %8 = vector.load %arg4[%c0_2, %c0_3] : memref<1x512xf32, #tpu.memory_space<vmem>>, vector<1x512xf32>
    %cst_4 = arith.constant dense<0.000000e+00> : vector<512xf32>
    %9 = vector.multi_reduction <add>, %7, %cst_4 [0] : vector<1x512xf32> to vector<512xf32>
    %10 = vector.shape_cast %9 : vector<512xf32> to vector<1x512xf32>
    %11 = arith.addf %8, %10 : vector<1x512xf32>
    %c0_5 = arith.constant 0 : index
    %c0_6 = arith.constant 0 : index
    %12 = vector.load %arg4[%c0_5, %c0_6] : memref<1x512xf32, #tpu.memory_space<vmem>>, vector<1x512xf32>
    tpu.vector_store %arg4[%c0_5, %c0_6], %11 {strides = array<i32>} : memref<1x512xf32, #tpu.memory_space<vmem>>, vector<1x512xf32>,
    %c0_i32_7 = arith.constant 0 : i32
    %13 = arith.cmpi eq, %arg1, %c0_i32_7 : i32
    %14 = arith.extui %13 : i1 to i32
    %c0_i32_8 = arith.constant 0 : i32
    %15 = arith.cmpi ne, %14, %c0_i32_8 : i32
    scf.if %15 {
      %c0_9 = arith.constant 0 : index
      %c0_10 = arith.constant 0 : index
      %16 = vector.load %arg4[%c0_9, %c0_10] : memref<1x512xf32, #tpu.memory_space<vmem>>, vector<1x512xf32>
      %c0_11 = arith.constant 0 : index
      %c0_12 = arith.constant 0 : index
      %17 = vector.load %arg3[%c0_11, %c0_12] : memref<1x512xf32, #tpu.memory_space<vmem>>, vector<1x512xf32>
      tpu.vector_store %arg3[%c0_11, %c0_12], %16 {strides = array<i32>} : memref<1x512xf32, #tpu.memory_space<vmem>>, vector<1x512xf32>,
    } else {
    }
    return
  }
  func.func @transform_0(%arg0: i32, %arg1: i32) -> (i32, i32) {
    %c1_i32 = arith.constant 1 : i32
    %0 = arith.muli %arg0, %c1_i32 : i32
    %1 = arith.addi %0, %arg1 : i32
    %c0_i32 = arith.constant 0 : i32
    %2 = arith.minsi %1, %c0_i32 : i32
    %c0_i32_0 = arith.constant 0 : i32
    %c0_i32_1 = arith.constant 0 : i32
    return %2, %c0_i32_0 : i32, i32
  }
  func.func @transform_1(%arg0: i32, %arg1: i32) -> (i32, i32) {
    %c0_i32 = arith.constant 0 : i32
    %c0_i32_0 = arith.constant 0 : i32
    return %arg0, %c0_i32 : i32, i32
  }
}

</mosaic_0001>

<bundles_post_ra>
// kernel: tpu_custom_call.1
= control target key start
LH: loop header
LB: loop body
LE: loop exit
PB: predicated region body
PF: predicated region fallthrough
CT: control target
= control target key end

     0   :  { %6 = vsyncpa [#allocation4], 0  ;;  %s174_s0 = inlined_call_operand.hbm [shape: f32[1,512], index: 0, kind: input, shape index: {}]   ;;  %s175_s1 = inlined_call_operand.hbm [shape: f32[1,512], index: 1, kind: output, shape index: {}]  }
   0x1   :  { %7 = vsyncpa [#allocation5], 0  ;;  %s127_s6 = smov [#allocation3]   ;;  %s79_s10 = scalar_lea.hbm %s174_s0, 64 }
   0x2   :  { %s20_s7 = sshll.u32 %s127_s6, 4  ;;  %p80_p0 = scmp.ne.s32.totalorder %s174_s0, %s79_s10  ;;  %s21_s7 = int_to_ptr.vmem [resolvable:$true] %s20_s7 }
   0x3   :  { %p83_p1 = scmp.lt.u32.totalorder %s79_s10, %s174_s0 }
   0x5   :  { %p85_p2 = pnand %p83_p1, %p80_p0 }
   0x7   :  { %88 = shalt.err (!%p85_p2)
}
   0x8   :  { %s89_s15 = scalar_lea.vmem %s21_s7, 64  ;;  %p94_p4 = scmp.lt.s32.totalorder %s21_s7, %s21_s7 }
   0x9   :  { %p90_p3 = scmp.ne.s32.totalorder %s21_s7, %s89_s15  ;;  %p95_p5 = scmp.lt.s32.totalorder %s89_s15, %s89_s15 }
   0xb   :  { %p96_p6 = por %p95_p5, %p94_p4 }
   0xd   :  { %p97_p7 = pnand %p96_p6, %p90_p3 }
   0xf   :  { %100 = shalt.err (!%p97_p7)
}
  0x10   :  { %23 = dma.hbm_to_vmem [thread:$0]  %s174_s0, 64, %s21_s7, [#allocation4]  }
  0x11   :  { %123 = dma.done.wait [#allocation4], 64  }
  0x12   :  { %124 = vsyncadd [#allocation4], 4294967232  ;;  %v34_v0 = vlaneseq  ;;  %v128_v2 = vmov 0.0   ;;  %v39_v3 = vld [vmem:[#allocation3] sm:$0xf]  ;;  %s129_s0 = smov [#allocation6]  }
  0x13   :  { %v40_v4 = vadd.f32 1e-07, %v39_v3  ;;  %s63_s18 = sshll.u32 %s129_s0, 4  ;;  %s64_s18 = int_to_ptr.vmem [resolvable:$true] %s63_s18 }
  0x14   :  { %vm152_vm0 = vcmp.lt.s32.totalorder %v34_v0, 512  ;;  %s101_s19 = scalar_lea.vmem %s64_s18, 64  ;;  %p106_p9 = scmp.lt.s32.totalorder %s64_s18, %s64_s18 }
  0x15   :  { %38 = vst.msk [vmem:[#allocation2] sm:$0xf] %vm152_vm0, %v128_v2  ;;  %77 = vlog2.f32 %v40_v4  ;;  %p102_p8 = scmp.ne.s32.totalorder %s64_s18, %s101_s19  ;;  %p107_p10 = scmp.lt.s32.totalorder %s101_s19, %s101_s19 }
  0x17   :  { %p108_p11 = por %p107_p10, %p106_p9 }
  0x19   :  { %p109_p12 = pnand %p108_p11, %p102_p8 }
  0x1c   :  { %v44_v7 = vld [vmem:[#allocation2] sm:$0xf] }
  0x1f   :  { %v78_v5 = vpop.eup %77 }
  0x20   :  { %v42_v6 = vmul.f32 0.6931472, %v78_v5 }
  0x22   :  { %v43_v8 = vmul.f32 %v42_v6, %v40_v4 }
  0x24   :  { %v46_v9 = vadd.f32 %v44_v7, %v43_v8 }
  0x26   :  { %51 = vst.msk [vmem:[#allocation2] sm:$0xf] %vm152_vm0, %v46_v9 }
  0x2d   :  { %v55_v10 = vld [vmem:[#allocation2] sm:$0xf] }
  0x2e   :  { %56 = vst.msk [vmem:[#allocation6] sm:$0xf] %vm152_vm0, %v55_v10 }
  0x2f   :  { %112 = shalt.err (!%p109_p12)
}
  0x30   :  { %s113_s22 = scalar_lea.hbm %s175_s1, 64 }
  0x31   :  { %p114_p13 = scmp.ne.s32.totalorder %s175_s1, %s113_s22  ;;  %p117_p0 = scmp.lt.u32.totalorder %s113_s22, %s175_s1 }
  0x33   :  { %p119_p1 = pnand %p117_p0, %p114_p13 }
  0x35   :  { %122 = shalt.err (!%p119_p1)
}
  0x36   :  { %66 = dma.vmem_to_hbm [thread:$0]  %s64_s18, 64, %s175_s1, [#allocation5]  }
  0x37   :  { %125 = dma.done.wait [#allocation5], 64  }
  0x38   :  { %126 = vsyncadd [#allocation5], 4294967232 }
  0x39   :  { %70 = vsyncpa [#allocation4], 1 }
  0x3a   :  { %71 = vsyncpa [#allocation5], 1 }

</bundles_post_ra>
